<compile_context>
chip_gen: v7x
topology: tpu7x:2x2x1
jax: 0.10.0
libtpu: 0.0.40
codegen_flags: <defaults>
</compile_context>

<pallas_src>
import functools

import jax
import jax.numpy as jnp
from jax.experimental import pallas as pl
from jax.experimental.pallas import tpu as pltpu


def _round_up(x, m):
    return ((x + m - 1) // m) * m


def _mlp_kernel(x1_ref, x2_ref,
                w1a_ref, w1b_ref, b1_ref,
                w2_ref, b2_ref,
                w3_ref, b3_ref,
                o_ref):
    """Fused hot path: split-fc1 (+bias,relu) -> fc2 (+bias,relu) -> fc3 (+bias,tanh)."""
    # Cast fp32 inputs to bf16 in-kernel (removes a wrapper-side HBM pass).
    x1 = x1_ref[...].astype(jnp.bfloat16)
    x2 = x2_ref[...].astype(jnp.bfloat16)

    # fc1 as two matmuls (no in-kernel concat of two narrow operands).
    h = (jnp.dot(x1, w1a_ref[...], preferred_element_type=jnp.float32)
         + jnp.dot(x2, w1b_ref[...], preferred_element_type=jnp.float32)
         + b1_ref[...])
    h = jnp.maximum(h, 0.0).astype(jnp.bfloat16)

    # fc2 + ReLU (hidden padded to 128 lanes -> full MXU columns).
    h = jnp.dot(h, w2_ref[...], preferred_element_type=jnp.float32) + b2_ref[...]
    h = jnp.maximum(h, 0.0).astype(jnp.bfloat16)

    # fc3 + tanh; output block is narrow (out_dim cols) fp32 -> small writeback.
    y = jnp.dot(h, w3_ref[...], preferred_element_type=jnp.float32) + b3_ref[...]
    o_ref[...] = jnp.tanh(y).astype(o_ref.dtype)


def pack_params(w1, b1, w2, b2, w3, b3, ob_rep_dim, act_rep_dim):
    """One-time packing of PyTorch nn.Linear params into kernel layout.

    Call ONCE (outside the per-step forward); the packed tensors are reused.
    Zero padding of the hidden lanes is exact through relu/tanh.
    """
    hidden = w1.shape[0]
    out_dim = w3.shape[0]
    assert w1.shape == (hidden, ob_rep_dim + act_rep_dim)
    assert w2.shape == (hidden, hidden)
    assert w3.shape == (out_dim, hidden)

    LANE = 128
    hp = _round_up(hidden, LANE)          # lane-dense hidden width (keep 128)
    bf16, f32 = jnp.bfloat16, jnp.float32

    w1_t = w1.T                                                   # (ob+act, hidden)
    w1a = jnp.zeros((ob_rep_dim, hp), bf16).at[:, :hidden].set(
        w1_t[:ob_rep_dim].astype(bf16))
    w1b = jnp.zeros((act_rep_dim, hp), bf16).at[:, :hidden].set(
        w1_t[ob_rep_dim:].astype(bf16))
    b1p = jnp.zeros((1, hp), f32).at[:, :hidden].set(b1[None, :])
    w2p = jnp.zeros((hp, hp), bf16).at[:hidden, :hidden].set(w2.T.astype(bf16))
    b2p = jnp.zeros((1, hp), f32).at[:, :hidden].set(b2[None, :])
    # Output stays narrow: only the real out_dim columns are ever written.
    w3p = jnp.zeros((hp, out_dim), bf16).at[:hidden, :].set(w3.T.astype(bf16))
    b3p = b3[None, :].astype(f32)
    return (w1a, w1b, b1p, w2p, b2p, w3p, b3p)


@functools.partial(jax.jit, static_argnames=("block_b",))
def latent_for_dyn_mlp(x1, x2, packed_params, *, block_b=2048):
    """Pallas-backed forward pass of LatentForDynMLP.

    x1 : (B, ob_rep_dim) float32     x2 : (B, act_rep_dim) float32
    packed_params : output of pack_params(...)
    returns: (B, ob_rep_dim) float32
    """
    w1a, w1b, b1p, w2p, b2p, w3p, b3p = packed_params
    B, ob = x1.shape
    _, act = x2.shape
    out_dim = w3p.shape[1]

    # Batch tiling: at least 2 grid steps (v7x megacore can shard "parallel"
    # axes), tile is a multiple of 8 sublanes, no batch over-padding - the
    # last block may be partial and Pallas masks its out-of-bounds rows
    # (per-row computation, so padding rows never contaminate valid rows).
    n_steps = max(2, pl.cdiv(B, block_b))
    tb = min(_round_up(pl.cdiv(B, n_steps), 8), _round_up(B, 8))
    grid = (pl.cdiv(B, tb),)

    # Weights/biases: constant block index -> pipeline keeps them resident in
    # VMEM across grid steps (only a few tens of KiB here).
    full = lambda a: pl.BlockSpec(a.shape, lambda i: (0, 0))

    return pl.pallas_call(
        _mlp_kernel,
        out_shape=jax.ShapeDtypeStruct((B, out_dim), jnp.float32),
        grid_spec=pltpu.PrefetchScalarGridSpec(
            num_scalar_prefetch=0,
            grid=grid,
            in_specs=[
                pl.BlockSpec((tb, ob), lambda i: (i, 0)),
                pl.BlockSpec((tb, act), lambda i: (i, 0)),
                full(w1a), full(w1b), full(b1p),
                full(w2p), full(b2p),
                full(w3p), full(b3p),
            ],
            out_specs=pl.BlockSpec((tb, out_dim), lambda i: (i, 0)),
        ),
        compiler_params=pltpu.CompilerParams(
            dimension_semantics=("parallel",),        # megacore sharding on v7x
            vmem_limit_bytes=32 * 1024 * 1024),        # safe on v5e/v6e/v7x
    )(x1, x2, w1a, w1b, b1p, w2p, b2p, w3p, b3p)


def _init_params(key, ob_rep_dim, act_rep_dim, hidden_dim):
    """Deterministic synthetic parameters in PyTorch nn.Linear layout."""
    ks = jax.random.split(key, 6)

    def lin(kw, kb, fan_in, fan_out):
        bound = 1.0 / (fan_in ** 0.5)
        w = jax.random.uniform(kw, (fan_out, fan_in), jnp.float32, -bound, bound)
        b = jax.random.uniform(kb, (fan_out,), jnp.float32, -bound, bound)
        return w, b

    w1, b1 = lin(ks[0], ks[1], ob_rep_dim + act_rep_dim, hidden_dim)
    w2, b2 = lin(ks[2], ks[3], hidden_dim, hidden_dim)
    w3, b3 = lin(ks[4], ks[5], hidden_dim, ob_rep_dim)
    return w1, b1, w2, b2, w3, b3


def _reference(x1, x2, w1, b1, w2, b2, w3, b3):
    """JAX reference matching the kernel's bf16-compute / fp32-accumulate path."""
    bf = jnp.bfloat16
    x = jnp.concatenate([x1, x2], axis=1).astype(bf)
    h = jax.nn.relu(jnp.dot(x, w1.T.astype(bf),
                            preferred_element_type=jnp.float32) + b1)
    h = jax.nn.relu(jnp.dot(h.astype(bf), w2.T.astype(bf),
                            preferred_element_type=jnp.float32) + b2)
    y = jnp.dot(h.astype(bf), w3.T.astype(bf),
                preferred_element_type=jnp.float32) + b3
    return jnp.tanh(y)


if __name__ == "__main__":
    ob_rep_dim, act_rep_dim, hidden_dim = 16, 8, 32
    batch = 12   # not a multiple of 8: exercises the partial last block + 2-step grid

    key = jax.random.PRNGKey(0)
    kx1, kx2, kp = jax.random.split(key, 3)
    x1 = jax.random.normal(kx1, (batch, ob_rep_dim), jnp.float32)
    x2 = jax.random.normal(kx2, (batch, act_rep_dim), jnp.float32)
    params = _init_params(kp, ob_rep_dim, act_rep_dim, hidden_dim)

    packed = pack_params(*params, ob_rep_dim, act_rep_dim)   # one-time packing
    out = latent_for_dyn_mlp(x1, x2, packed)
    out = jax.block_until_ready(out)

    ref = _reference(x1, x2, *params)
    assert out.shape == (batch, ob_rep_dim), out.shape
    # bf16 weights/activations with fp32 accumulation: intentional precision
    # trade vs. the fp32 PyTorch baseline (kernel is HBM-bound).
    assert jnp.allclose(out, ref, atol=2e-3, rtol=2e-3), \
        "mismatch vs JAX reference"

    print("KERNEL_OK")
</pallas_src>

<mosaic_0001>
module attributes {stable_mosaic.version = 11 : i64} {
  func.func @_mlp_kernel(%arg0: i32, %arg1: memref<8x16xf32, #tpu.memory_space<vmem>>, %arg2: memref<8x8xf32, #tpu.memory_space<vmem>>, %arg3: memref<16x128xbf16, #tpu.memory_space<vmem>>, %arg4: memref<8x128xbf16, #tpu.memory_space<vmem>>, %arg5: memref<1x128xf32, #tpu.memory_space<vmem>>, %arg6: memref<128x128xbf16, #tpu.memory_space<vmem>>, %arg7: memref<1x128xf32, #tpu.memory_space<vmem>>, %arg8: memref<128x16xbf16, #tpu.memory_space<vmem>>, %arg9: memref<1x16xf32, #tpu.memory_space<vmem>>, %arg10: memref<8x16xf32, #tpu.memory_space<vmem>>) attributes {dimension_semantics = [#tpu.dimension_semantics<parallel>], iteration_bounds = array<i64: 2>, scalar_prefetch = 0 : i64, scratch_operands = 0 : i64, tpu.core_type = #tpu.core_type<tc>, window_params = [{transform_indices = @transform_0, window_bounds = array<i64: 8, 16>}, {transform_indices = @transform_1, window_bounds = array<i64: 8, 8>}, {pipeline_mode = #tpu.pipeline_mode<synchronous>, transform_indices = @transform_2, window_bounds = array<i64: 16, 128>}, {pipeline_mode = #tpu.pipeline_mode<synchronous>, transform_indices = @transform_3, window_bounds = array<i64: 8, 128>}, {pipeline_mode = #tpu.pipeline_mode<synchronous>, transform_indices = @transform_4, window_bounds = array<i64: 1, 128>}, {pipeline_mode = #tpu.pipeline_mode<synchronous>, transform_indices = @transform_5, window_bounds = array<i64: 128, 128>}, {pipeline_mode = #tpu.pipeline_mode<synchronous>, transform_indices = @transform_6, window_bounds = array<i64: 1, 128>}, {pipeline_mode = #tpu.pipeline_mode<synchronous>, transform_indices = @transform_7, window_bounds = array<i64: 128, 16>}, {pipeline_mode = #tpu.pipeline_mode<synchronous>, transform_indices = @transform_8, window_bounds = array<i64: 1, 16>}, {transform_indices = @transform_9, window_bounds = array<i64: 8, 16>}]} {
    %c0 = arith.constant 0 : index
    %c0_0 = arith.constant 0 : index
    %0 = vector.load %arg1[%c0, %c0_0] : memref<8x16xf32, #tpu.memory_space<vmem>>, vector<8x16xf32>
    %1 = arith.truncf %0 : vector<8x16xf32> to vector<8x16xbf16>
    %c0_1 = arith.constant 0 : index
    %c0_2 = arith.constant 0 : index
    %2 = vector.load %arg2[%c0_1, %c0_2] : memref<8x8xf32, #tpu.memory_space<vmem>>, vector<8x8xf32>
    %3 = arith.truncf %2 : vector<8x8xf32> to vector<8x8xbf16>
    %c0_3 = arith.constant 0 : index
    %c0_4 = arith.constant 0 : index
    %4 = vector.load %arg3[%c0_3, %c0_4] : memref<16x128xbf16, #tpu.memory_space<vmem>>, vector<16x128xbf16>
    %cst = arith.constant dense<0.000000e+00> : vector<8x128xf32>
    %5 = tpu.matmul %1, %4, %cst {dimension_numbers = #tpu.dot_dimension_numbers<[1], [0], [0], [1], [0, 0, 1, 1], [], []>} : vector<8x16xbf16>, vector<16x128xbf16>, vector<8x128xf32> -> vector<8x128xf32>
    %c0_5 = arith.constant 0 : index
    %c0_6 = arith.constant 0 : index
    %6 = vector.load %arg4[%c0_5, %c0_6] : memref<8x128xbf16, #tpu.memory_space<vmem>>, vector<8x128xbf16>
    %cst_7 = arith.constant dense<0.000000e+00> : vector<8x128xf32>
    %7 = tpu.matmul %3, %6, %cst_7 {dimension_numbers = #tpu.dot_dimension_numbers<[1], [0], [0], [1], [0, 0, 1, 1], [], []>} : vector<8x8xbf16>, vector<8x128xbf16>, vector<8x128xf32> -> vector<8x128xf32>
    %8 = arith.addf %5, %7 : vector<8x128xf32>
    %c0_8 = arith.constant 0 : index
    %c0_9 = arith.constant 0 : index
    %9 = vector.load %arg5[%c0_8, %c0_9] : memref<1x128xf32, #tpu.memory_space<vmem>>, vector<1x128xf32>
    %10 = vector.broadcast %9 : vector<1x128xf32> to vector<8x128xf32>
    %11 = arith.addf %8, %10 : vector<8x128xf32>
    %cst_10 = arith.constant 0.000000e+00 : f32
    %12 = vector.broadcast %cst_10 : f32 to vector<8x128xf32>
    %13 = arith.maximumf %11, %12 : vector<8x128xf32>
    %14 = arith.truncf %13 : vector<8x128xf32> to vector<8x128xbf16>
    %c0_11 = arith.constant 0 : index
    %c0_12 = arith.constant 0 : index
    %15 = vector.load %arg6[%c0_11, %c0_12] : memref<128x128xbf16, #tpu.memory_space<vmem>>, vector<128x128xbf16>
    %cst_13 = arith.constant dense<0.000000e+00> : vector<8x128xf32>
    %16 = tpu.matmul %14, %15, %cst_13 {dimension_numbers = #tpu.dot_dimension_numbers<[1], [0], [0], [1], [0, 0, 1, 1], [], []>} : vector<8x128xbf16>, vector<128x128xbf16>, vector<8x128xf32> -> vector<8x128xf32>
    %c0_14 = arith.constant 0 : index
    %c0_15 = arith.constant 0 : index
    %17 = vector.load %arg7[%c0_14, %c0_15] : memref<1x128xf32, #tpu.memory_space<vmem>>, vector<1x128xf32>
    %18 = vector.broadcast %17 : vector<1x128xf32> to vector<8x128xf32>
    %19 = arith.addf %16, %18 : vector<8x128xf32>
    %cst_16 = arith.constant 0.000000e+00 : f32
    %20 = vector.broadcast %cst_16 : f32 to vector<8x128xf32>
    %21 = arith.maximumf %19, %20 : vector<8x128xf32>
    %22 = arith.truncf %21 : vector<8x128xf32> to vector<8x128xbf16>
    %c0_17 = arith.constant 0 : index
    %c0_18 = arith.constant 0 : index
    %23 = vector.load %arg8[%c0_17, %c0_18] : memref<128x16xbf16, #tpu.memory_space<vmem>>, vector<128x16xbf16>
    %cst_19 = arith.constant dense<0.000000e+00> : vector<8x16xf32>
    %24 = tpu.matmul %22, %23, %cst_19 {dimension_numbers = #tpu.dot_dimension_numbers<[1], [0], [0], [1], [0, 0, 1, 1], [], []>} : vector<8x128xbf16>, vector<128x16xbf16>, vector<8x16xf32> -> vector<8x16xf32>
    %c0_20 = arith.constant 0 : index
    %c0_21 = arith.constant 0 : index
    %25 = vector.load %arg9[%c0_20, %c0_21] : memref<1x16xf32, #tpu.memory_space<vmem>>, vector<1x16xf32>
    %26 = vector.broadcast %25 : vector<1x16xf32> to vector<8x16xf32>
    %27 = arith.addf %24, %26 : vector<8x16xf32>
    %28 = math.tanh %27 : vector<8x16xf32>
    %c0_22 = arith.constant 0 : index
    %c0_23 = arith.constant 0 : index
    %29 = vector.load %arg10[%c0_22, %c0_23] : memref<8x16xf32, #tpu.memory_space<vmem>>, vector<8x16xf32>
    tpu.vector_store %arg10[%c0_22, %c0_23], %28 {strides = array<i32>} : memref<8x16xf32, #tpu.memory_space<vmem>>, vector<8x16xf32>,
    return
  }
  func.func @transform_0(%arg0: i32) -> (i32, i32) {
    %c0_i32 = arith.constant 0 : i32
    %c0_i32_0 = arith.constant 0 : i32
    return %arg0, %c0_i32 : i32, i32
  }
  func.func @transform_1(%arg0: i32) -> (i32, i32) {
    %c0_i32 = arith.constant 0 : i32
    %c0_i32_0 = arith.constant 0 : i32
    return %arg0, %c0_i32 : i32, i32
  }
  func.func @transform_2(%arg0: i32) -> (i32, i32) {
    %c0_i32 = arith.constant 0 : i32
    %c0_i32_0 = arith.constant 0 : i32
    %c0_i32_1 = arith.constant 0 : i32
    return %c0_i32, %c0_i32_0 : i32, i32
  }
  func.func @transform_3(%arg0: i32) -> (i32, i32) {
    %c0_i32 = arith.constant 0 : i32
    %c0_i32_0 = arith.constant 0 : i32
    %c0_i32_1 = arith.constant 0 : i32
    return %c0_i32, %c0_i32_0 : i32, i32
  }
  func.func @transform_4(%arg0: i32) -> (i32, i32) {
    %c0_i32 = arith.constant 0 : i32
    %c0_i32_0 = arith.constant 0 : i32
    %c0_i32_1 = arith.constant 0 : i32
    return %c0_i32, %c0_i32_0 : i32, i32
  }
  func.func @transform_5(%arg0: i32) -> (i32, i32) {
    %c0_i32 = arith.constant 0 : i32
    %c0_i32_0 = arith.constant 0 : i32
    %c0_i32_1 = arith.constant 0 : i32
    return %c0_i32, %c0_i32_0 : i32, i32
  }
  func.func @transform_6(%arg0: i32) -> (i32, i32) {
    %c0_i32 = arith.constant 0 : i32
    %c0_i32_0 = arith.constant 0 : i32
    %c0_i32_1 = arith.constant 0 : i32
    return %c0_i32, %c0_i32_0 : i32, i32
  }
  func.func @transform_7(%arg0: i32) -> (i32, i32) {
    %c0_i32 = arith.constant 0 : i32
    %c0_i32_0 = arith.constant 0 : i32
    %c0_i32_1 = arith.constant 0 : i32
    return %c0_i32, %c0_i32_0 : i32, i32
  }
  func.func @transform_8(%arg0: i32) -> (i32, i32) {
    %c0_i32 = arith.constant 0 : i32
    %c0_i32_0 = arith.constant 0 : i32
    %c0_i32_1 = arith.constant 0 : i32
    return %c0_i32, %c0_i32_0 : i32, i32
  }
  func.func @transform_9(%arg0: i32) -> (i32, i32) {
    %c0_i32 = arith.constant 0 : i32
    %c0_i32_0 = arith.constant 0 : i32
    return %arg0, %c0_i32 : i32, i32
  }
}

</mosaic_0001>

<bundles_post_ra>
// kernel: latent_for_dyn_mlp.1
= control target key start
LH: loop header
LB: loop body
LE: loop exit
PB: predicated region body
PF: predicated region fallthrough
CT: control target
= control target key end

     0   :  { %14 = vsyncpa [#allocation3], 0  ;;  %s1250_s0 = inlined_call_operand.vmem [shape: f32[12,16], index: 0, kind: input, shape index: {}]   ;;  %s1251_s1 = inlined_call_operand.vmem [shape: f32[12,8], index: 1, kind: input, shape index: {}]   ;;  %s1252_s2 = inlined_call_operand.vmem [shape: bf16[16,128], index: 2, kind: input, shape index: {}]   ;;  %s1253_s3 = inlined_call_operand.vmem [shape: bf16[8,128], index: 3, kind: input, shape index: {}]   ;;  %s1254_s4 = inlined_call_operand.vmem [shape: f32[1,128], index: 4, kind: input, shape index: {}]   ;;  %s1255_s5 = inlined_call_operand.vmem [shape: bf16[128,128], index: 5, kind: input, shape index: {}]   ;;  %s1256_s6 = inlined_call_operand.vmem [shape: f32[1,128], index: 6, kind: input, shape index: {}]   ;;  %s1257_s7 = inlined_call_operand.vmem [shape: bf16[128,16], index: 7, kind: input, shape index: {}]   ;;  %s1258_s8 = inlined_call_operand.vmem [shape: f32[1,16], index: 8, kind: input, shape index: {}]   ;;  %s1259_s9 = inlined_call_operand.hbm [shape: f32[12,16], index: 9, kind: output, shape index: {}]  }
   0x1   :  { %16 = vsyncpa [#allocation3 + $0x1], 0  ;;  %s1056_s30 = smov 0   ;;  %s1058_s10 = smov 0  }
   0x2   :  { %s1060_s11 = smov 0   ;;  %s1062_s12 = smov 0  }
   0x3 LB: > { %s1077_s13 = sadd.s32 4294967295, %s1001_s12   ;;  %s772_s14 = sadd.s32 4294967294, %s1001_s12   ;;  %s1001_s12 = sphi %s1062_s12, %s1265_s12   ;;  %s997_s11 = sphi %s1060_s11, %s1264_s11   ;;  %s993_s10 = sphi %s1058_s10, %s1263_s10   ;;  %s989_s30 = sphi %s1056_s30, %s1262_s30  }
   0x4   : > { %s1081_s15 = sadd.s32 1, %s1001_s12   ;;  %s228_s16 = sadd.s32 1, %s997_s11 }
   0x5   : > { %s225_s17 = ssub.s32 %s1001_s12, %s1081_s15  ;;  %p238_p0 = scmp.ne.s32.totalorder %s997_s11, %s993_s10 }
   0x6   : > { %p226_p1 = scmp.eq.s32.totalorder %s225_s17, 0  ;;  %p239_p2 = scmp.eq.s32.totalorder %s1077_s13, 1 }
   0x7   : > { %p244_p3 = scmp.ne.s32.totalorder %s993_s10, %s989_s30  ;;  %p245_p4 = scmp.eq.s32.totalorder %s772_s14, 1 }
   0x8   : > { %s1092_s18 = scalar_select %p226_p1, %s997_s11, %s228_s16  }
   0x9   : > { %p1094_p5 = por %p239_p2, %p238_p0  ;;  %p1098_p6 = por %p245_p4, %p244_p3 }
   0xa   : > { %p775_p7 = scmp.ge.s32.totalorder %s1001_s12, 1  ;;  %p298_p8 = scmp.lt.s32.totalorder %s1001_s12, 3 }
   0xc   : > { %p299_p9 = pnand %p775_p7, %p298_p8 }
   0xd   : > { %v352_v0 = vld [vmem:[%s1253_s3] sm:$0xf] (!%p299_p9)  ;;  %vm357_vm0 = vcmask (!%p299_p9), 1043456   ;;  %v1003_v1 = vmov (!%p299_p9), 0.0   ;;  %p337_p10 = scmp.lt.s32.totalorder (!%p299_p9), %s1077_s13, 1  ;;  %vm1004_vm1 = vmmov (!%p299_p9), 0  }
   0xe   : > { %302 = sbr.rel (%p299_p9) target bundleno = 706 (0x2c2), region = 56  ;;  %827 = vmatprep.subr.bf16.mxu0 (!%p299_p9), %v1003_v1  ;;  %833 = vmatprep.subr.bf16.mxu1 (!%p299_p9), %v1003_v1  ;;  %v359_v2 = vsel (!%p299_p9), %vm357_vm0, %v352_v0, 0  ;;  %v920_v3 = vld [vmem:[%s1252_s2] sm:$0xff] (!%p299_p9)   ;;  %vm353_vm2 = vcmask (!%p299_p9), 64512   ;;  %vm407_vm3 = vcmask (!%p299_p9), 130048   ;;  %v922_v9 = vld [vmem:[%s1255_s5 + $0x8] sm:$0xff] (!%p299_p9)  }
   0xf   : > { %828 = vmatpush3.bf16.msra.mxu0 (!%p299_p9), %v359_v2  ;;  %829 = vmatprep.mubr.msk.bf16.mxu0 (!%p299_p9), %vm1004_vm1, %v1003_v1  ;;  %v921_v6 = vld [vmem:[%s1255_s5] sm:$0xff] (!%p299_p9)   ;;  %v923_v10 = vld [vmem:[%s1255_s5 + $0x10] sm:$0xff] (!%p299_p9)   ;;  %v924_v11 = vld [vmem:[%s1255_s5 + $0x18] sm:$0xff] (!%p299_p9)   ;;  %s334_s23 = sand.u32 (!%p299_p9), 1, %s993_s10  }
  0x10   : > { %834 = vmatpush3.bf16.msra.mxu1 (!%p299_p9), %v920_v3  ;;  %835 = vmatprep.mubr.msk.bf16.mxu1 (!%p299_p9), %vm1004_vm1, %v1003_v1  ;;  %v925_v12 = vld [vmem:[%s1255_s5 + $0x20] sm:$0xff] (!%p299_p9)   ;;  %v926_v13 = vld [vmem:[%s1255_s5 + $0x28] sm:$0xff] (!%p299_p9)   ;;  %v927_v14 = vld [vmem:[%s1255_s5 + $0x30] sm:$0xff] (!%p299_p9)   ;;  %s776_s24 = sshll.u32 (!%p299_p9), %s334_s23, 3  ;;  %s688_s16 = scalar_lea.sflag (!%p299_p9), [#allocation3], %s334_s23 }
  0x11   : > { %839 = vmatprep.subr.bf16.mxu0 (!%p299_p9), %v1003_v1  ;;  %859 = vmatprep.subr.bf16.mxu1 (!%p299_p9), %v1003_v1  ;;  %v928_v15 = vld [vmem:[%s1255_s5 + $0x38] sm:$0xff] (!%p299_p9)   ;;  %v929_v16 = vld [vmem:[%s1257_s7] sm:$0xff] (!%p299_p9)   ;;  %v930_v17 = vld [vmem:[%s1257_s7 + $0x8] sm:$0xff] (!%p299_p9)  }
  0x12   : > { %v931_v18 = vld [vmem:[%s1257_s7 + $0x10] sm:$0xff] (!%p299_p9)   ;;  %v932_v19 = vld [vmem:[%s1257_s7 + $0x18] sm:$0xff] (!%p299_p9)   ;;  %v933_v20 = vld [vmem:[%s1257_s7 + $0x20] sm:$0xff] (!%p299_p9)  }
  0x13   : > { %v934_v21 = vld [vmem:[%s1257_s7 + $0x28] sm:$0xff] (!%p299_p9)   ;;  %v782_v24 = vld [vmem:[%s1254_s4] ss:$0 sm:$0xff] (!%p299_p9)  ;;  %v935_v35 = vld [vmem:[%s1257_s7 + $0x30] sm:$0xff] (!%p299_p9)  }
  0x14   : > { %v936_v36 = vld [vmem:[%s1257_s7 + $0x38] sm:$0xff] (!%p299_p9)   ;;  %v783_v37 = vld [vmem:[%s1256_s6] ss:$0 sm:$0xff] (!%p299_p9) }
  0x15   : > { %s338_s25 = scalar_select %p337_p10, %s1077_s13, 1  ;;  %v792_v45 = vld [vmem:[%s1258_s8] ss:$0 sm:$0xff] }
  0x17   : > { %s777_s26 = sshll.u32 %s338_s25, 3  ;;  %s802_s25 = sshll.u32 %s1077_s13, 7 }
  0x18   : > { %s344_s29 = scalar_lea.vmem %s1251_s1, %s777_s26  ;;  %s340_s17 = scalar_lea.vmem %s1250_s0, %s777_s26 }
  0x19   : > { %v348_v4 = vld [vmem:[%s344_s29] sm:$0xff]  ;;  %s336_s26 = scalar_lea.vmem [#allocation2], %s776_s24  ;;  %s1207_s14 = scalar_lea.hbm %s1259_s9, %s802_s25 }
  0x1a   : > { %v346_v5 = vld [vmem:[%s340_s17] sm:$0xff]  ;;  %v349_v7 = vpack.c.bf16 %v348_v4, %v348_v4  ;;  %s701_s27 = sshll.u32 %s336_s26, 4  ;;  %s1005_s13 = smov [#allocation2]   ;;  %s1209_s27 = int_to_ptr.vmem [resolvable:$true] %s701_s27 }
  0x1b   : > { %v347_v8 = vpack.c.bf16 %v346_v5, %v346_v5  ;;  %s939_s17 = scalar_lea.vmem %s1209_s27, 128  ;;  %s943_s21 = sshll.u32 %s1005_s13, 4  ;;  %s944_s21 = int_to_ptr.vmem [resolvable:$false] %s943_s21 }
  0x1c   : > { %830 = vmatmul.mubr.msk.bf16.vlgmr.msra.gmra.mrb[0].mxu0 %vm353_vm2, %v349_v7  ;;  %p940_p11 = scmp.ne.s32.totalorder %s1209_s27, %s939_s17  ;;  %s945_s22 = scalar_lea.vmem %s944_s21, 256 }
  0x1d   : > { %836 = vmatmul.mubr.msk.bf16.vlgmr.msra.gmra.mrb[0].mxu1 %vm407_vm3, %v347_v8  ;;  %840 = vmatpush3.bf16.msra.mxu0 %v921_v6  ;;  %p946_p0 = scmp.lt.s32.totalorder %s1209_s27, %s944_s21  ;;  %p947_p1 = scmp.lt.s32.totalorder %s945_s22, %s939_s17 }
  0x1e   : > { %855 = vmatprep.mubr.msk.bf16.mxu0 %vm1004_vm1, %v1003_v1  ;;  %841 = vmatprep.subr.bf16.mxu0 %v1003_v1  ;;  %p941_p12 = pnand %p940_p11, %p1094_p5 }
  0x1f   : > { %875 = vmatprep.mubr.msk.bf16.mxu1 %vm1004_vm1, %v1003_v1  ;;  %860 = vmatpush3.bf16.msra.mxu1 %v929_v16  ;;  %p948_p2 = por %p947_p1, %p946_p0 }
  0x20   : > { %861 = vmatprep.subr.bf16.mxu1 %v1003_v1  ;;  %p942_p13 = pneg %p941_p12 }
  0x21   : > { %842 = vmatpush3.bf16.msra.mxu0 %v922_v9 }
  0x22   : > { %843 = vmatprep.subr.bf16.mxu0 %v1003_v1  ;;  %p949_p3 = pnand %p948_p2, %p942_p13 }
  0x23   : > { %862 = vmatpush3.bf16.msra.mxu1 %v930_v17 }
  0x24   : > { %863 = vmatprep.subr.bf16.mxu1 %v1003_v1 }
  0x25   : > { %844 = vmatpush3.bf16.msra.mxu0 %v923_v10 }
  0x26   : > { %845 = vmatprep.subr.bf16.mxu0 %v1003_v1 }
  0x27   : > { %864 = vmatpush3.bf16.msra.mxu1 %v931_v18 }
  0x28   : > { %865 = vmatprep.subr.bf16.mxu1 %v1003_v1 }
  0x29   : > { %846 = vmatpush3.bf16.msra.mxu0 %v924_v11 }
  0x2a   : > { %847 = vmatprep.subr.bf16.mxu0 %v1003_v1 }
  0x2b   : > { %866 = vmatpush3.bf16.msra.mxu1 %v932_v19 }
  0x2c   : > { %867 = vmatprep.subr.bf16.mxu1 %v1003_v1 }
  0x2d   : > { %848 = vmatpush3.bf16.msra.mxu0 %v925_v12 }
  0x2e   : > { %849 = vmatprep.subr.bf16.mxu0 %v1003_v1 }
  0x2f   : > { %868 = vmatpush3.bf16.msra.mxu1 %v933_v20 }
  0x30   : > { %869 = vmatprep.subr.bf16.mxu1 %v1003_v1 }
  0x31   : > { %850 = vmatpush3.bf16.msra.mxu0 %v926_v13 }
  0x32   : > { %851 = vmatprep.subr.bf16.mxu0 %v1003_v1 }
  0x33   : > { %870 = vmatpush3.bf16.msra.mxu1 %v934_v21 }
  0x34   : > { %871 = vmatprep.subr.bf16.mxu1 %v1003_v1 }
  0x35   : > { %852 = vmatpush3.bf16.msra.mxu0 %v927_v14 }
  0x36   : > { %853 = vmatprep.subr.bf16.mxu0 %v1003_v1 }
  0x37   : > { %872 = vmatpush3.bf16.msra.mxu1 %v935_v35 }
  0x38   : > { %873 = vmatprep.subr.bf16.mxu1 %v1003_v1 }
  0x39   : > { %854 = vmatpush3.bf16.msra.mxu0 %v928_v15 }
  0x3b   : > { %874 = vmatpush3.bf16.msra.mxu1 %v936_v36 }
  0xef   : > { %v395_v22 = vpop.f32.mrb[0].mxu0 }
  0xf0   : > { %v445_v23 = vpop.f32.mrb[0].mxu1  ;;  %v831_v26 = vpop.f32.mrb[1].mxu0 }
  0xf1   : > { %v446_v25 = vadd.f32 %v445_v23, %v395_v22  ;;  %v837_v27 = vpop.f32.mrb[1].mxu1  ;;  %v398_v28 = vpop.f32.mrb[2].mxu0 }
  0xf2   : > { %v448_v29 = vpop.f32.mrb[2].mxu1  ;;  %v832_v31 = vpop.f32.mrb[3].mxu0 }
  0xf3   : > { %v458_v30 = vadd.f32 %v782_v24, %v446_v25  ;;  %v838_v32 = vpop.f32.mrb[3].mxu1 }
  0xf5   : > { %v459_v33 = vmax.f32 %v458_v30, 0.0 }
  0xf7   : > { %v460_v34 = vpack.c.bf16 %v459_v33, %v459_v33 }
  0xf9   : > { %856 = vmatmul.mubr.bf16.vlgmr.msra.gmra.mrb[4].mxu0 %v460_v34 }
 0x1cc   : > { %v566_v38 = vpop.f32.mrb[4].mxu0 }
 0x1cd   : > { %v567_v39 = vadd.f32 %v783_v37, %v566_v38  ;;  %v857_v40 = vpop.f32.mrb[5].mxu0 }
 0x1ce   : > { %v569_v41 = vpop.f32.mrb[6].mxu0 }
 0x1cf   : > { %v572_v42 = vmax.f32 %v567_v39, 0.0  ;;  %v858_v43 = vpop.f32.mrb[7].mxu0 }
 0x1d1   : > { %v573_v44 = vpack.c.bf16 %v572_v42, %v572_v42 }
 0x1d3   : > { %876 = vmatmul.mubr.bf16.vlgmr.msra.gmra.mrb[4].mxu1 %v573_v44 }
 0x2a6   : > { %v679_v46 = vpop.f32.mrb[4].mxu1 }
 0x2a7   : > { %v680_v47 = vadd.f32 %v792_v45, %v679_v46  ;;  %v877_v48 = vpop.f32.mrb[5].mxu1 }
 0x2a8   : > { %v682_v49 = vpop.f32.mrb[6].mxu1 }
 0x2a9   : > { %937 = vtanh.f32 %v680_v47  ;;  %v878_v50 = vpop.f32.mrb[7].mxu1 }
 0x2b3   : > { %v938_v51 = vpop.eup %937 }
 0x2b4   : > { %686 = vst.msk [vmem:[%s336_s26] sm:$0xff] %vm407_vm3, %v938_v51 }
 0x2b5   : > { %952 = shalt.err (!%p949_p3)
}
 0x2b6   : > { %s953_s23 = scalar_lea.hbm %s1207_s14, 128  ;;  %s957_s26 = scalar_lea.hbm %s1259_s9, 256 }
 0x2b7   : > { %p954_p4 = scmp.ne.s32.totalorder %s1207_s14, %s953_s23  ;;  %p958_p9 = scmp.lt.u32.totalorder %s1207_s14, %s1259_s9 }
 0x2b8   : > { %p959_p10 = scmp.lt.u32.totalorder %s957_s26, %s953_s23  ;;  %p961_p12 = scmp.lt.u32.totalorder %s953_s23, %s1207_s14 }
 0x2b9   : > { %p955_p7 = pnand %p954_p4, %p1094_p5 }
 0x2ba   : > { %p960_p11 = por %p959_p10, %p958_p9 }
 0x2bb   : > { %p956_p8 = pneg %p955_p7 }
 0x2bc   : > { %p962_p13 = por %p961_p12, %p960_p11 }
 0x2be   : > { %p963_p0 = pnand %p962_p13, %p956_p8 }
 0x2c0   : > { %966 = shalt.err (!%p963_p0)
}
 0x2c1   : > { %879 = dma.vmem_to_hbm [thread:$0]  (%p1094_p5), %s1209_s27, 128, %s1207_s14, %s688_s16  }
 0x2c2 PF: > { %p885_p1 = scmp.ge.s32.totalorder %s1001_s12, 2  ;;  %s713_s17 = sand.u32 1, %s989_s30  }
 0x2c3   : > { %s714_s13 = scalar_lea.sflag [#allocation3], %s713_s17 }
 0x2c4   : > { %p882_p2 = pnand %p885_p1, %p1098_p6 }
 0x2c6   : > { %984 = dma.done.wait (!%p882_p2), %s714_s13, 128  }
 0x2c7   : > { %986 = vsyncadd (!%p882_p2), %s714_s13, 4294967168  ;;  %p19_p3 = scmp.ge.s32.totalorder %s1081_s15, 4   ;;  %s1262_s30 = smov %s993_s10 }
 0x2c8   : > { %s1263_s10 = smov %s997_s11  ;;  %s1264_s11 = smov %s1092_s18 }
 0x2c9   : > { %s1265_s12 = smov %s1081_s15  ;;  %21 = sbr.rel (!%p19_p3) target bundleno = 3 (0x3), region = 94 }
 0x2d0   :  { %719 = vsyncpa [#allocation3], 1 }
 0x2d1   :  { %721 = vsyncpa [#allocation3 + $0x1], 1 }

</bundles_post_ra>
